<compile_context>
chip_gen: v5e
topology: v5e:2x2
jax: 0.10.0
libtpu: 0.0.40
codegen_flags: <defaults>
</compile_context>

<pallas_src>
import functools

import jax
import jax.numpy as jnp
from jax.experimental import pallas as pl
from jax.experimental.pallas import tpu as pltpu

DROP_P = 0.6
KEEP_P = 1.0 - DROP_P
# 24-bit uniform integers in [0, 2^24); keep iff r < KEEP_P * 2^24
RAND_BITS = 24
KEEP_THRESHOLD = int(KEEP_P * (1 << RAND_BITS))
LANE = 128


def _policy_kernel(x_ref, bits_ref, w1_ref, w2_ref, o_ref, *,
                   out_valid, train, approx_recip):
    # ---- inputLayer: x @ W1 (bias=False) on the MXU, f32 accumulation ----
    h = jnp.dot(x_ref[...], w1_ref[...], preferred_element_type=jnp.float32)

    # ---- Dropout(p=0.6, training) fused with ReLU: one select on the (bt,H) tile ----
    if train:
        keep = bits_ref[...] < KEEP_THRESHOLD          # integer threshold compare
        h = jnp.where(keep & (h > 0.0), h * (1.0 / KEEP_P), 0.0)
    else:
        h = jnp.maximum(h, 0.0)

    # ---- hiddenLayer: h @ W2 (W2 zero-padded to a lane-dense 128-wide output) ----
    logits = jnp.dot(h.astype(w2_ref.dtype), w2_ref[...],
                     preferred_element_type=jnp.float32)

    # Mask padding lanes so the softmax only covers the real output columns.
    lane = jax.lax.broadcasted_iota(jnp.int32, logits.shape, 1)
    logits = jnp.where(lane < out_valid, logits, -jnp.inf)

    # ---- Softmax(dim=-1), numerically stable ----
    m = jnp.max(logits, axis=-1, keepdims=True)
    e = jnp.exp(logits - m)
    denom = jnp.sum(e, axis=-1, keepdims=True)
    if approx_recip:
        inv = pl.reciprocal(denom, approx=True)        # EUP vrcp slot on TPU
    else:
        inv = 1.0 / denom                              # portable fallback
    o_ref[...] = (e * inv).astype(o_ref.dtype)


def policy_forward(x, w1, w2, key, *, train=True, block_rows=512,
                   mxu_dtype=jnp.bfloat16):
    """x: (B, IN); w1: (IN, H); w2: (H, OUT).

    Weights are stored transposed w.r.t. torch.nn.Linear (in_features,
    out_features) so the kernel does plain row-major matmuls.
    """
    B, IN = x.shape
    H = w1.shape[1]
    OUT = w2.shape[1]
    out_pad = max(LANE, ((OUT + LANE - 1) // LANE) * LANE)

    # Dropout randomness generated wrapper-side (works both under Mosaic and
    # the Pallas interpreter); one int32 in [0, 2^24) per hidden activation.
    bits = jax.random.randint(key, (B, H), 0, 1 << RAND_BITS, dtype=jnp.int32)

    # bf16 MXU operands (set mxu_dtype=jnp.float32 for exact f32 parity);
    # elementwise math stays f32 inside the kernel.
    xm = x.astype(mxu_dtype)
    w1m = w1.astype(mxu_dtype)
    w2m = jnp.pad(w2, ((0, 0), (0, out_pad - OUT))).astype(mxu_dtype)

    bt = min(block_rows, B)
    grid = (pl.cdiv(B, bt),)

    kernel = functools.partial(
        _policy_kernel,
        out_valid=OUT,
        train=train,
        approx_recip=(jax.default_backend() == "tpu"),
    )

    out = pl.pallas_call(
        kernel,
        out_shape=jax.ShapeDtypeStruct((B, out_pad), jnp.float32),
        grid=grid,
        in_specs=[
            pl.BlockSpec((bt, IN), lambda i: (i, 0)),        # x batch tile
            pl.BlockSpec((bt, H), lambda i: (i, 0)),         # dropout bits tile
            pl.BlockSpec((IN, H), lambda i: (0, 0)),         # W1, VMEM-resident
            pl.BlockSpec((H, out_pad), lambda i: (0, 0)),    # W2, VMEM-resident
        ],
        out_specs=pl.BlockSpec((bt, out_pad), lambda i: (i, 0)),
        compiler_params=pltpu.CompilerParams(
            dimension_semantics=("parallel",)),
    )(xm, bits, w1m, w2m)

    return out[:, :OUT]


def init_params(key, input_size, hidden_size, output_size):
    """Mimics torch.nn.Linear default init: U(-1/sqrt(fan_in), 1/sqrt(fan_in))."""
    k1, k2 = jax.random.split(key)
    b1 = 1.0 / jnp.sqrt(input_size)
    b2 = 1.0 / jnp.sqrt(hidden_size)
    # stored transposed: (in_features, out_features)
    w1 = jax.random.uniform(k1, (input_size, hidden_size), jnp.float32, -b1, b1)
    w2 = jax.random.uniform(k2, (hidden_size, output_size), jnp.float32, -b2, b2)
    return w1, w2


if __name__ == "__main__":
    input_size, hidden_size, output_size = 32, 64, 8
    batch = 8

    key = jax.random.PRNGKey(0)
    kx, kp, kd = jax.random.split(key, 3)
    x = jax.random.normal(kx, (batch, input_size), dtype=jnp.float32)
    w1, w2 = init_params(kp, input_size, hidden_size, output_size)

    out = policy_forward(x, w1, w2, kd, train=True)
    out = jax.block_until_ready(out)

    # sanity: softmax rows must sum to 1 and be finite
    row_sums = jnp.sum(out, axis=-1)
    assert out.shape == (batch, output_size)
    assert bool(jnp.all(jnp.isfinite(out)))
    assert bool(jnp.all(jnp.abs(row_sums - 1.0) < 2e-3))

    print("KERNEL_OK")
</pallas_src>

<mosaic_0001>
module attributes {stable_mosaic.version = 11 : i64} {
  func.func @_policy_kernel(%arg0: i32, %arg1: memref<8x32xbf16, #tpu.memory_space<vmem>>, %arg2: memref<8x64xi32, #tpu.memory_space<vmem>>, %arg3: memref<32x64xbf16, #tpu.memory_space<vmem>>, %arg4: memref<64x128xbf16, #tpu.memory_space<vmem>>, %arg5: memref<8x128xf32, #tpu.memory_space<vmem>>) attributes {dimension_semantics = [#tpu.dimension_semantics<parallel>], iteration_bounds = array<i64: 1>, scalar_prefetch = 0 : i64, scratch_operands = 0 : i64, tpu.core_type = #tpu.core_type<tc>, window_params = [{transform_indices = @transform_0, window_bounds = array<i64: 8, 32>}, {transform_indices = @transform_1, window_bounds = array<i64: 8, 64>}, {pipeline_mode = #tpu.pipeline_mode<synchronous>, transform_indices = @transform_2, window_bounds = array<i64: 32, 64>}, {pipeline_mode = #tpu.pipeline_mode<synchronous>, transform_indices = @transform_3, window_bounds = array<i64: 64, 128>}, {transform_indices = @transform_4, window_bounds = array<i64: 8, 128>}]} {
    %c0 = arith.constant 0 : index
    %c0_0 = arith.constant 0 : index
    %0 = vector.load %arg1[%c0, %c0_0] : memref<8x32xbf16, #tpu.memory_space<vmem>>, vector<8x32xbf16>
    %c0_1 = arith.constant 0 : index
    %c0_2 = arith.constant 0 : index
    %1 = vector.load %arg3[%c0_1, %c0_2] : memref<32x64xbf16, #tpu.memory_space<vmem>>, vector<32x64xbf16>
    %cst = arith.constant dense<0.000000e+00> : vector<8x64xf32>
    %2 = tpu.matmul %0, %1, %cst {dimension_numbers = #tpu.dot_dimension_numbers<[1], [0], [0], [1], [0, 0, 1, 1], [], []>} : vector<8x32xbf16>, vector<32x64xbf16>, vector<8x64xf32> -> vector<8x64xf32>
    %c0_3 = arith.constant 0 : index
    %c0_4 = arith.constant 0 : index
    %3 = vector.load %arg2[%c0_3, %c0_4] : memref<8x64xi32, #tpu.memory_space<vmem>>, vector<8x64xi32>
    %c6710886_i32 = arith.constant 6710886 : i32
    %4 = vector.broadcast %c6710886_i32 : i32 to vector<8x64xi32>
    %5 = arith.cmpi slt, %3, %4 : vector<8x64xi32>
    %cst_5 = arith.constant 0.000000e+00 : f32
    %6 = vector.broadcast %cst_5 : f32 to vector<8x64xf32>
    %7 = arith.cmpf ogt, %2, %6 : vector<8x64xf32>
    %8 = arith.andi %5, %7 : vector<8x64xi1>
    %cst_6 = arith.constant 2.500000e+00 : f32
    %9 = vector.broadcast %cst_6 : f32 to vector<8x64xf32>
    %10 = arith.mulf %2, %9 : vector<8x64xf32>
    %cst_7 = arith.constant 0.000000e+00 : f32
    %11 = vector.broadcast %cst_7 : f32 to vector<8x64xf32>
    %12 = arith.select %8, %10, %11 : vector<8x64xi1>, vector<8x64xf32>
    %13 = arith.truncf %12 : vector<8x64xf32> to vector<8x64xbf16>
    %c0_8 = arith.constant 0 : index
    %c0_9 = arith.constant 0 : index
    %14 = vector.load %arg4[%c0_8, %c0_9] : memref<64x128xbf16, #tpu.memory_space<vmem>>, vector<64x128xbf16>
    %cst_10 = arith.constant dense<0.000000e+00> : vector<8x128xf32>
    %15 = tpu.matmul %13, %14, %cst_10 {dimension_numbers = #tpu.dot_dimension_numbers<[1], [0], [0], [1], [0, 0, 1, 1], [], []>} : vector<8x64xbf16>, vector<64x128xbf16>, vector<8x128xf32> -> vector<8x128xf32>
    %16 = tpu.iota {dimensions = array<i32: 1>} : vector<8x128xi32>
    %c8_i32 = arith.constant 8 : i32
    %17 = vector.broadcast %c8_i32 : i32 to vector<8x128xi32>
    %18 = arith.cmpi slt, %16, %17 : vector<8x128xi32>
    %cst_11 = arith.constant 0xFF800000 : f32
    %19 = vector.broadcast %cst_11 : f32 to vector<8x128xf32>
    %20 = arith.select %18, %15, %19 : vector<8x128xi1>, vector<8x128xf32>
    %cst_12 = arith.constant dense<0xFF800000> : vector<8xf32>
    %21 = vector.multi_reduction <maximumf>, %20, %cst_12 [1] : vector<8x128xf32> to vector<8xf32>
    %22 = vector.shape_cast %21 : vector<8xf32> to vector<8x1xf32>
    %23 = vector.broadcast %22 : vector<8x1xf32> to vector<8x128xf32>
    %24 = arith.subf %20, %23 : vector<8x128xf32>
    %25 = math.exp %24 : vector<8x128xf32>
    %cst_13 = arith.constant dense<0.000000e+00> : vector<8xf32>
    %26 = vector.multi_reduction <add>, %25, %cst_13 [1] : vector<8x128xf32> to vector<8xf32>
    %27 = vector.shape_cast %26 : vector<8xf32> to vector<8x1xf32>
    %cst_14 = arith.constant 1.000000e+00 : f32
    %28 = vector.broadcast %cst_14 : f32 to vector<8x1xf32>
    %29 = arith.divf %28, %27 : vector<8x1xf32>
    %30 = vector.broadcast %29 : vector<8x1xf32> to vector<8x128xf32>
    %31 = arith.mulf %25, %30 : vector<8x128xf32>
    %c0_15 = arith.constant 0 : index
    %c0_16 = arith.constant 0 : index
    %32 = vector.load %arg5[%c0_15, %c0_16] : memref<8x128xf32, #tpu.memory_space<vmem>>, vector<8x128xf32>
    tpu.vector_store %arg5[%c0_15, %c0_16], %31 {strides = array<i32>} : memref<8x128xf32, #tpu.memory_space<vmem>>, vector<8x128xf32>,
    return
  }
  func.func @transform_0(%arg0: i32) -> (i32, i32) {
    %c0_i32 = arith.constant 0 : i32
    %c0_i32_0 = arith.constant 0 : i32
    return %arg0, %c0_i32 : i32, i32
  }
  func.func @transform_1(%arg0: i32) -> (i32, i32) {
    %c0_i32 = arith.constant 0 : i32
    %c0_i32_0 = arith.constant 0 : i32
    return %arg0, %c0_i32 : i32, i32
  }
  func.func @transform_2(%arg0: i32) -> (i32, i32) {
    %c0_i32 = arith.constant 0 : i32
    %c0_i32_0 = arith.constant 0 : i32
    %c0_i32_1 = arith.constant 0 : i32
    return %c0_i32, %c0_i32_0 : i32, i32
  }
  func.func @transform_3(%arg0: i32) -> (i32, i32) {
    %c0_i32 = arith.constant 0 : i32
    %c0_i32_0 = arith.constant 0 : i32
    %c0_i32_1 = arith.constant 0 : i32
    return %c0_i32, %c0_i32_0 : i32, i32
  }
  func.func @transform_4(%arg0: i32) -> (i32, i32) {
    %c0_i32 = arith.constant 0 : i32
    %c0_i32_0 = arith.constant 0 : i32
    return %arg0, %c0_i32 : i32, i32
  }
}

</mosaic_0001>

<bundles_post_ra>
// kernel: tpu_custom_call.1
= control target key start
LH: loop header
LB: loop body
LE: loop exit
PB: predicated region body
PF: predicated region fallthrough
CT: control target
= control target key end

     0   :  { %9 = vsyncpa [#allocation3], 0  ;;  %s433_s0 = inlined_call_operand.hbm [shape: bf16[8,32], index: 0, kind: input, shape index: {}]   ;;  %s434_s1 = inlined_call_operand.hbm [shape: s32[8,64], index: 1, kind: input, shape index: {}]   ;;  %s435_s2 = inlined_call_operand.hbm [shape: bf16[32,64], index: 2, kind: input, shape index: {}]   ;;  %s436_s3 = inlined_call_operand.hbm [shape: bf16[64,128], index: 3, kind: input, shape index: {}]   ;;  %s437_s4 = inlined_call_operand.hbm [shape: f32[8,128], index: 4, kind: output, shape index: {}]  }
   0x1   :  { %10 = vsyncpa [#allocation6], 0 }
   0x2   :  { %11 = vsyncpa [#allocation9], 0  ;;  %s29_s17 = sshll.u32 %s434_s1, 4  ;;  %s30_s17 = int_to_ptr.hbm [resolvable:$true] %s29_s17 }
   0x3   :  { %12 = vsyncpa [#allocation4], 0  ;;  %s386_s18 = smov [#allocation5]   ;;  %s18_s22 = sshll.u32 %s433_s0, 4  ;;  %s19_s22 = int_to_ptr.hbm [resolvable:$true] %s18_s22 }
   0x4   :  { %s31_s19 = sshll.u32 %s386_s18, 4  ;;  %s387_s23 = smov [#allocation2]   ;;  %s32_s19 = int_to_ptr.vmem [resolvable:$true] %s31_s19 }
   0x5   :  { %34 = dma.hbm_to_vmem [thread:$0]  %s30_s17, 128, %s32_s19, [#allocation6]  }
   0x6   :  { %s20_s24 = sshll.u32 %s387_s23, 4  ;;  %s39_s27 = sshll.u32 %s435_s2, 4  ;;  %s21_s24 = int_to_ptr.vmem [resolvable:$true] %s20_s24  ;;  %s40_s27 = int_to_ptr.hbm [resolvable:$true] %s39_s27 }
   0x7   :  { %23 = dma.hbm_to_vmem [thread:$0]  %s19_s22, 64, %s21_s24, [#allocation3]  }
   0x8   :  { %s388_s1 = smov [#allocation7]   ;;  %s52_s5 = sshll.u32 %s436_s3, 4  ;;  %s53_s5 = int_to_ptr.hbm [resolvable:$true] %s52_s5 }
   0x9   :  { %s41_s28 = sshll.u32 %s388_s1, 4  ;;  %s389_s6 = smov 64   ;;  %s42_s28 = int_to_ptr.vmem [resolvable:$true] %s41_s28 }
   0xa   :  { %s390_s0 = smov 4   ;;  %s391_s7 = smov [#allocation8]  }
   0xb   :  { %47 = dma.hbm_to_vmem [thread:$0]  %s40_s27, 256, %s42_s28, [#allocation6], %s389_s6, %s389_s6, %s390_s0  }
   0xc   :  { %s54_s8 = sshll.u32 %s391_s7, 4  ;;  %s55_s8 = int_to_ptr.vmem [resolvable:$true] %s54_s8 }
   0xd   :  { %60 = dma.hbm_to_vmem [thread:$0]  %s53_s5, 512, %s55_s8, [#allocation9], %s389_s6, %s389_s6, %s390_s0  }
   0xe   :  { %378 = dma.done.wait [#allocation3], 64  }
   0xf   :  { %379 = vsyncadd [#allocation3], 4294967232 }
  0x10   :  { %380 = dma.done.wait [#allocation6], 384  }
  0x11   :  { %381 = vsyncadd [#allocation6], 4294966912 }
  0x12   :  { %382 = dma.done.wait [#allocation9], 512  }
  0x13   :  { %383 = vsyncadd [#allocation9], 4294966784  ;;  %v242_v0 = vld [vmem:[#allocation7 + $0x8] sm:$0xff]  ;;  %v241_v2 = vld [vmem:[#allocation7] sm:$0xff]  ;;  %vm95_vm0 = vcmask 261120   ;;  %vm151_vm4 = vcmask 523264   ;;  %v168_v13 = vlaneseq }
  0x14   :  { %v246_v1 = vld [vmem:[#allocation8 + $0x18] sm:$0xff]  ;;  %105 = vmatpush.bf16.msra.mxu0 %v242_v0  ;;  %v245_v3 = vld [vmem:[#allocation8 + $0x10] sm:$0xff]  ;;  %v78_v4 = vld [vmem:[#allocation2] sm:$0xf]  ;;  %s392_s2 = smov [#allocation10]   ;;  %s203_s11 = sshll.u32 %s437_s4, 4  ;;  %s204_s11 = int_to_ptr.hbm [resolvable:$true] %s203_s11 }
  0x15   :  { %159 = vmatpush.bf16.msra.mxu1 %v246_v1  ;;  %v244_v5 = vld [vmem:[#allocation8 + $0x8] sm:$0xff]  ;;  %v243_v6 = vld [vmem:[#allocation8] sm:$0xff]  ;;  %v169_v14 = vand.u32 127, %v168_v13  ;;  %s201_s3 = sshll.u32 %s392_s2, 4  ;;  %s202_s3 = int_to_ptr.vmem [resolvable:$true] %s201_s3 }
  0x16   :  { %v112_v7 = vld [vmem:[#allocation5] sm:$0xff] }
  0x17   :  { %vm113_vm1 = vcmp.lt.s32.totalorder %v112_v7, 6710886  ;;  %vm170_vm5 = vcmp.lt.s32.totalorder %v169_v14, 8 }
  0x18   :  { %106 = vmatpush.bf16.msra.mxu0 %v241_v2 }
  0x19   :  { %160 = vmatpush.bf16.msra.mxu1 %v245_v3 }
  0x1b   :  { %223 = vmatmul.msk.bf16.vlgmr.msra.gmra.mxu0 %vm95_vm0, %v78_v4 }
  0x1d   :  { %161 = vmatpush.bf16.msra.mxu1 %v244_v5 }
  0x21   :  { %162 = vmatpush.bf16.msra.mxu1 %v243_v6 }
  0x98   :  { %v108_v8 = vpop.f32.mrf.mxu0 }
  0x99   :  { %vm114_vm2 = vcmp.gt.f32.partialorder %v108_v8, 0.0  ;;  %v116_v9 = vmul.f32 2.5, %v108_v8 }
  0x9a   :  { %vm115_vm3 = vmand %vm113_vm1, %vm114_vm2 }
  0x9b   :  { %v117_v10 = vsel %vm115_vm3, %v116_v9, 0.0 }
  0x9c   :  { %v118_v11 = vpack.c.bf16 %v117_v10, %v117_v10 }
  0x9e   :  { %240 = vmatmul.msk.bf16.vlgmr.msra.gmra.mxu1 %vm151_vm4, %v118_v11 }
  0xa0   :  { %v110_v12 = vpop.f32.mrf.mxu0 }
 0x11b   :  { %v164_v15 = vpop.f32.mrf.mxu1 }
 0x11c   :  { %v171_v16 = vsel %vm170_vm5, %v164_v15, -inf }
 0x11d   :  { %172 = vmax.xlane.f32.xlu0 %v171_v16 }
 0x123   :  { %v166_v17 = vpop.f32.mrf.mxu1 }
 0x190   :  { %v173_v18 = vpop.xlane.xlu0 %172 }
 0x191   :  { %v174_v19 = vsub.f32 %v171_v16, %v173_v18 }
 0x193   :  { %v175_v20 = vmul.f32 1.442695, %v174_v19 }
 0x195   :  { %254 = vpow2.f32 %v175_v20 }
 0x19b   :  { %v255_v21 = vpop.eup %254 }
 0x19c   :  { %177 = vadd.xlane.f32.xlu0 %v255_v21 }
 0x20f   :  { %v178_v22 = vpop.xlane.xlu0 %177 }
 0x210   :  { %256 = vrcp.f32 %v178_v22  ;;  %v190_v26 = vand.u32 2147483648, %v178_v22  ;;  %v188_v28 = vand.u32 2147483647, %v178_v22  ;;  %vm184_vm7 = vweird.f32 %v178_v22 }
 0x212   :  { %v191_v30 = vor.u32 1.1754944e-38, %v190_v26  ;;  %vm189_vm9 = vcmp.eq.f32.partialorder %v188_v28, 8.507059e+37 }
 0x216   :  { %v257_v23 = vpop.eup %256 }
 0x217   :  { %v180_v24 = vmul.f32 %v257_v23, %v178_v22  ;;  %vm185_vm6 = vweird.f32 %v257_v23 }
 0x218   :  { %vm186_vm8 = vmor %vm184_vm7, %vm185_vm6 }
 0x219   :  { %v181_v25 = vsub.f32 1.0, %v180_v24 }
 0x21b   :  { %v182_v27 = vmul.f32 %v257_v23, %v181_v25 }
 0x21d   :  { %v183_v29 = vadd.f32 %v257_v23, %v182_v27 }
 0x21f   :  { %v187_v31 = vsel %vm186_vm8, %v257_v23, %v183_v29 }
 0x220   :  { %v192_v32 = vsel %vm189_vm9, %v191_v30, %v187_v31 }
 0x221   :  { %v194_v33 = vmul.f32 %v255_v21, %v192_v32 }
 0x223   :  { %195 = vst [vmem:[#allocation10] sm:$0xff] %v194_v33 }
 0x224   :  { %206 = dma.vmem_to_hbm [thread:$0]  %s202_s3, 128, %s204_s11, [#allocation4]  }
 0x225   :  { %384 = dma.done.wait [#allocation4], 128  }
 0x226   :  { %385 = vsyncadd [#allocation4], 4294967168 }
 0x227   :  { %211 = vsyncpa [#allocation3], 1 }
 0x228   :  { %212 = vsyncpa [#allocation6], 1 }
 0x229   :  { %213 = vsyncpa [#allocation9], 1 }
 0x22a   :  { %214 = vsyncpa [#allocation4], 1 }

</bundles_post_ra>
